<compile_context>
chip_gen: v6e
topology: v6e:2x2x1
jax: 0.10.0
libtpu: 0.0.40
codegen_flags: <defaults>
</compile_context>

<pallas_src>
import jax
import jax.numpy as jnp
from jax.experimental import pallas as pl
from jax.experimental.pallas import tpu as pltpu

NEG_SLOPE = 0.01      # F.leaky_relu default negative_slope
NO_EDGE = -1.0e9      # non-edges never enter the DGL mailbox -> ~zero softmax weight
ZERO_E = -1000.0      # reduce_func quirk: mailbox entries with e == 0 get -1000.0


def _project_kernel(h_ref, w_ref, a_ref, z_ref, e_ref):
    """Stage 1: z = h @ W (f32 MXU) plus the two per-node attention scalars.

    attn_fc(cat([z_src, z_dst])) == z_src·a[:D] + z_dst·a[D:], so each node only needs
    (a_src·z, a_dst·z).  The scalars (and therefore the e == 0.0 quirk) are computed
    from the f32 z; only the z handed to stage 2 is cast to bf16.
    """
    z = jnp.dot(h_ref[...], w_ref[...], preferred_element_type=jnp.float32)  # [tn, D] f32
    z_ref[...] = z.astype(z_ref.dtype)                                       # bf16 out
    e_src = jnp.sum(z * a_ref[0:1, :], axis=1, keepdims=True)                # a_src · z
    e_dst = jnp.sum(z * a_ref[1:2, :], axis=1, keepdims=True)                # a_dst · z
    e_ref[...] = jnp.concatenate([e_src, e_dst], axis=1)                     # one store


def _attention_kernel(e_dst_ref, e_src_ref, adj_ref, z_ref, out_ref, m_sc, l_sc):
    """Stage 2: masked softmax + aggregation, online softmax over src tiles.

    e_dst / e_src / z are full-extent VMEM-resident (constant block index); adj is the
    only per-step DMA.  The accumulator is the out block itself (k-invariant index).
    """
    i = pl.program_id(0)
    k = pl.program_id(1)
    tile_m, tile_n = adj_ref.shape

    @pl.when(k == 0)
    def _init():
        m_sc[...] = jnp.full_like(m_sc, -jnp.inf)
        l_sc[...] = jnp.zeros_like(l_sc)
        out_ref[...] = jnp.zeros_like(out_ref)

    row_off = pl.multiple_of(i * tile_m, tile_m)
    col_off = pl.multiple_of(k * tile_n, tile_n)
    e_dst = e_dst_ref[pl.ds(row_off, tile_m), :]            # [tile_m, 1] f32
    e_src = e_src_ref[:, pl.ds(col_off, tile_n)]            # [1, tile_n] f32

    # e_ij = leaky_relu(a_src·z_j + a_dst·z_i)   (f32: exact == 0.0 quirk)
    logits = e_dst + e_src                                   # [tile_m, tile_n]
    logits = jnp.where(logits >= 0.0, logits, NEG_SLOPE * logits)   # leaky_relu
    logits = jnp.where(logits == 0.0, ZERO_E, logits)               # e == 0 -> -1000
    logits = jnp.where(adj_ref[...] != 0, logits, NO_EDGE)          # non-edges masked

    m_prev = m_sc[...]
    m_new = jnp.maximum(m_prev, jnp.max(logits, axis=1, keepdims=True))
    corr = jnp.exp(m_prev - m_new)
    p = jnp.exp(logits - m_new)                                      # [tile_m, tile_n]
    l_sc[...] = corr * l_sc[...] + jnp.sum(p, axis=1, keepdims=True)

    z_tile = z_ref[pl.ds(col_off, tile_n), :]                        # [tile_n, D] bf16
    out_ref[...] = corr * out_ref[...] + jnp.dot(
        p.astype(z_tile.dtype), z_tile, preferred_element_type=jnp.float32)
    m_sc[...] = m_new

    @pl.when(k == pl.num_programs(1) - 1)
    def _finalize():
        out_ref[...] = out_ref[...] * pl.reciprocal(l_sc[...], approx=True)


def psgat_forward(h, dst_idx, adj, fc_weight, attn_weight, *,
                  tile_m=128, tile_n=256, proj_tile=256):
    """h: [N, in_dim] p-node features; dst_idx: [M] int32 rows of h for the s-nodes;
       adj: [M, N] int8 (nonzero = edge src j -> dst i);
       fc_weight: [out_dim, in_dim] (nn.Linear layout); attn_weight: [1, 2*out_dim].
       Returns [M, out_dim] == h[snode_id] of the PyTorch forward."""
    N, in_dim = h.shape
    out_dim = fc_weight.shape[0]
    M = dst_idx.shape[0]
    assert N % tile_n == 0 and M % tile_m == 0 and N % proj_tile == 0

    # VMEM-resident z in stage 2: fine up to ~24 MiB (v7x budget).  Beyond that,
    # switch the z BlockSpec back to per-src-tile blocks and raise vmem_limit_bytes.
    assert N * out_dim * 2 <= 24 * 1024 * 1024, "z too large for resident-VMEM path"

    w = jnp.transpose(fc_weight)                    # [in_dim, out_dim]
    a2 = attn_weight.reshape(2, out_dim)            # row 0 = a_src, row 1 = a_dst

    # ---- stage 1: projection + per-node attention scalars (grid over node tiles) ----
    z, e_nodes = pl.pallas_call(
        _project_kernel,
        out_shape=(jax.ShapeDtypeStruct((N, out_dim), jnp.bfloat16),
                   jax.ShapeDtypeStruct((N, 2), jnp.float32)),
        grid_spec=pltpu.PrefetchScalarGridSpec(
            num_scalar_prefetch=0,
            grid=(N // proj_tile,),
            in_specs=[
                pl.BlockSpec((proj_tile, in_dim), lambda i: (i, 0)),  # h tile
                pl.BlockSpec((in_dim, out_dim), lambda i: (0, 0)),    # W (grid-invariant)
                pl.BlockSpec((2, out_dim), lambda i: (0, 0)),         # [a_src; a_dst]
            ],
            out_specs=(
                pl.BlockSpec((proj_tile, out_dim), lambda i: (i, 0)), # z (bf16, lane-dense)
                pl.BlockSpec((proj_tile, 2), lambda i: (i, 0)),       # per-node scalars
            ),
        ),
        compiler_params=pltpu.CompilerParams(dimension_semantics=("parallel",)),
    )(h, w, a2)

    # ---- glue: tiny O(N)/O(M) element ops.  z_dst == z[dst_idx], so only the scalar
    # a_dst·z contribution is gathered.
    e_src_row = e_nodes[:, 0].reshape(1, N)
    e_dst_col = e_nodes[dst_idx, 1].reshape(M, 1)

    # ---- stage 2: tiled masked softmax + aggregation (dst-parallel, src-reduction) ----
    out = pl.pallas_call(
        _attention_kernel,
        out_shape=jax.ShapeDtypeStruct((M, out_dim), jnp.float32),
        grid_spec=pltpu.PrefetchScalarGridSpec(
            num_scalar_prefetch=0,
            grid=(M // tile_m, N // tile_n),          # dst tiles x src tiles
            in_specs=[
                pl.BlockSpec((M, 1), lambda i, k: (0, 0)),             # e_dst (resident)
                pl.BlockSpec((1, N), lambda i, k: (0, 0)),             # e_src (resident)
                pl.BlockSpec((tile_m, tile_n), lambda i, k: (i, k)),   # adj (int8)
                pl.BlockSpec((N, out_dim), lambda i, k: (0, 0)),       # z (bf16, resident)
            ],
            out_specs=pl.BlockSpec((tile_m, out_dim), lambda i, k: (i, 0)),
            scratch_shapes=[
                pltpu.VMEM((tile_m, 1), jnp.float32),        # running max
                pltpu.VMEM((tile_m, 1), jnp.float32),        # running denominator
            ],
        ),
        compiler_params=pltpu.CompilerParams(
            dimension_semantics=("parallel", "arbitrary")),
    )(e_dst_col, e_src_row, adj, z)

    return out


def reference_psgat(h, dst_idx, adj, fc_weight, attn_weight):
    """Pure-JAX f32 reference matching the PyTorch/DGL semantics."""
    out_dim = fc_weight.shape[0]
    z = h @ fc_weight.T
    a_src = attn_weight[0, :out_dim]
    a_dst = attn_weight[0, out_dim:]
    logits = (z @ a_dst)[dst_idx][:, None] + (z @ a_src)[None, :]
    logits = jnp.where(logits >= 0.0, logits, NEG_SLOPE * logits)
    logits = jnp.where(logits == 0.0, ZERO_E, logits)
    logits = jnp.where(adj != 0, logits, NO_EDGE)
    alpha = jax.nn.softmax(logits, axis=1)
    return alpha @ z


if __name__ == "__main__":
    # Small but hardware-tile-aligned shapes: feature dims multiples of 128 lanes,
    # node counts chosen so both stages have >= 2 grid steps (v7x megacore) and the
    # stage-2 src-reduction axis actually pipelines.
    in_dim, out_dim, feat_embed_size = 128, 128, 64   # feat_fc output is unused
    N, M = 512, 256    # N = p ("source") nodes, M = s ("destination") nodes

    key = jax.random.PRNGKey(0)
    k_h, k_w, k_a, k_adj = jax.random.split(key, 4)

    h = jax.random.normal(k_h, (N, in_dim), dtype=jnp.float32)
    fc_weight = jax.random.normal(k_w, (out_dim, in_dim), dtype=jnp.float32) * 0.05
    attn_weight = jax.random.normal(k_a, (1, 2 * out_dim), dtype=jnp.float32) * 0.05

    # synthetic graph: int8 adjacency mask, s-nodes share rows 0..M-1 of h
    adj = jax.random.bernoulli(k_adj, 0.3, (M, N)).astype(jnp.int8)
    adj = adj.at[:, 0].set(1)             # every dst node has at least one in-edge
    dst_idx = jnp.arange(M, dtype=jnp.int32)

    out = psgat_forward(h, dst_idx, adj, fc_weight, attn_weight)
    out = jax.block_until_ready(out)

    ref = reference_psgat(h, dst_idx, adj, fc_weight, attn_weight)
    assert out.shape == (M, out_dim)
    # Tolerance covers the bf16 MXU operands (z, p) and the EUP approximate reciprocal;
    # the attention logits / e == 0.0 quirk / masking are still exact f32.
    assert jnp.allclose(out, ref, rtol=2e-2, atol=2e-2), "mismatch vs reference"

    print("KERNEL_OK")
</pallas_src>

<mosaic_0001>
module attributes {stable_mosaic.version = 11 : i64} {
  func.func @_project_kernel(%arg0: i32, %arg1: memref<256x128xf32, #tpu.memory_space<vmem>>, %arg2: memref<128x128xf32, #tpu.memory_space<vmem>>, %arg3: memref<2x128xf32, #tpu.memory_space<vmem>>, %arg4: memref<256x128xbf16, #tpu.memory_space<vmem>>, %arg5: memref<256x2xf32, #tpu.memory_space<vmem>>) attributes {dimension_semantics = [#tpu.dimension_semantics<parallel>], iteration_bounds = array<i64: 2>, scalar_prefetch = 0 : i64, scratch_operands = 0 : i64, tpu.core_type = #tpu.core_type<tc>, window_params = [{transform_indices = @transform_0, window_bounds = array<i64: 256, 128>}, {pipeline_mode = #tpu.pipeline_mode<synchronous>, transform_indices = @transform_1, window_bounds = array<i64: 128, 128>}, {pipeline_mode = #tpu.pipeline_mode<synchronous>, transform_indices = @transform_2, window_bounds = array<i64: 2, 128>}, {transform_indices = @transform_3, window_bounds = array<i64: 256, 128>}, {transform_indices = @transform_4, window_bounds = array<i64: 256, 2>}]} {
    %c0 = arith.constant 0 : index
    %c0_0 = arith.constant 0 : index
    %0 = vector.load %arg1[%c0, %c0_0] : memref<256x128xf32, #tpu.memory_space<vmem>>, vector<256x128xf32>
    %c0_1 = arith.constant 0 : index
    %c0_2 = arith.constant 0 : index
    %1 = vector.load %arg2[%c0_1, %c0_2] : memref<128x128xf32, #tpu.memory_space<vmem>>, vector<128x128xf32>
    %cst = arith.constant dense<0.000000e+00> : vector<256x128xf32>
    %2 = tpu.matmul %0, %1, %cst {dimension_numbers = #tpu.dot_dimension_numbers<[1], [0], [0], [1], [0, 0, 1, 1], [], []>} : vector<256x128xf32>, vector<128x128xf32>, vector<256x128xf32> -> vector<256x128xf32>
    %3 = arith.truncf %2 : vector<256x128xf32> to vector<256x128xbf16>
    %c0_3 = arith.constant 0 : index
    %c0_4 = arith.constant 0 : index
    %4 = vector.load %arg4[%c0_3, %c0_4] : memref<256x128xbf16, #tpu.memory_space<vmem>>, vector<256x128xbf16>
    tpu.vector_store %arg4[%c0_3, %c0_4], %3 {strides = array<i32>} : memref<256x128xbf16, #tpu.memory_space<vmem>>, vector<256x128xbf16>,
    %c0_5 = arith.constant 0 : index
    %c0_6 = arith.constant 0 : index
    %5 = vector.load %arg3[%c0_5, %c0_6] : memref<2x128xf32, #tpu.memory_space<vmem>>, vector<1x128xf32>
    %6 = vector.broadcast %5 : vector<1x128xf32> to vector<256x128xf32>
    %7 = arith.mulf %2, %6 : vector<256x128xf32>
    %cst_7 = arith.constant dense<0.000000e+00> : vector<256xf32>
    %8 = vector.multi_reduction <add>, %7, %cst_7 [1] : vector<256x128xf32> to vector<256xf32>
    %9 = vector.shape_cast %8 : vector<256xf32> to vector<256x1xf32>
    %c1 = arith.constant 1 : index
    %c0_8 = arith.constant 0 : index
    %10 = vector.load %arg3[%c1, %c0_8] : memref<2x128xf32, #tpu.memory_space<vmem>>, vector<1x128xf32>
    %11 = vector.broadcast %10 : vector<1x128xf32> to vector<256x128xf32>
    %12 = arith.mulf %2, %11 : vector<256x128xf32>
    %cst_9 = arith.constant dense<0.000000e+00> : vector<256xf32>
    %13 = vector.multi_reduction <add>, %12, %cst_9 [1] : vector<256x128xf32> to vector<256xf32>
    %14 = vector.shape_cast %13 : vector<256xf32> to vector<256x1xf32>
    %15 = tpu.concatenate %9, %14 in 1 : vector<256x1xf32>, vector<256x1xf32> -> vector<256x2xf32>
    %c0_10 = arith.constant 0 : index
    %c0_11 = arith.constant 0 : index
    %16 = vector.load %arg5[%c0_10, %c0_11] : memref<256x2xf32, #tpu.memory_space<vmem>>, vector<256x2xf32>
    tpu.vector_store %arg5[%c0_10, %c0_11], %15 {strides = array<i32>} : memref<256x2xf32, #tpu.memory_space<vmem>>, vector<256x2xf32>,
    return
  }
  func.func @transform_0(%arg0: i32) -> (i32, i32) {
    %c0_i32 = arith.constant 0 : i32
    %c0_i32_0 = arith.constant 0 : i32
    return %arg0, %c0_i32 : i32, i32
  }
  func.func @transform_1(%arg0: i32) -> (i32, i32) {
    %c0_i32 = arith.constant 0 : i32
    %c0_i32_0 = arith.constant 0 : i32
    %c0_i32_1 = arith.constant 0 : i32
    return %c0_i32, %c0_i32_0 : i32, i32
  }
  func.func @transform_2(%arg0: i32) -> (i32, i32) {
    %c0_i32 = arith.constant 0 : i32
    %c0_i32_0 = arith.constant 0 : i32
    %c0_i32_1 = arith.constant 0 : i32
    return %c0_i32, %c0_i32_0 : i32, i32
  }
  func.func @transform_3(%arg0: i32) -> (i32, i32) {
    %c0_i32 = arith.constant 0 : i32
    %c0_i32_0 = arith.constant 0 : i32
    return %arg0, %c0_i32 : i32, i32
  }
  func.func @transform_4(%arg0: i32) -> (i32, i32) {
    %c0_i32 = arith.constant 0 : i32
    %c0_i32_0 = arith.constant 0 : i32
    return %arg0, %c0_i32 : i32, i32
  }
}

</mosaic_0001>

<bundles_post_ra>
// kernel: tpu_custom_call.1
= control target key start
LH: loop header
LB: loop body
LE: loop exit
PB: predicated region body
PF: predicated region fallthrough
CT: control target
= control target key end

     0   :  { %10 = vsyncpa [#allocation3], 0  ;;  %s2208_s0 = inlined_call_operand.hbm [shape: f32[512,128], index: 0, kind: input, shape index: {}]   ;;  %s2209_s1 = inlined_call_operand.hbm [shape: f32[128,128], index: 1, kind: input, shape index: {}]   ;;  %s2210_s2 = inlined_call_operand.vmem [shape: f32[2,128], index: 2, kind: input, shape index: {}]   ;;  %s2211_s3 = inlined_call_operand.hbm [shape: bf16[512,128], index: 3, kind: output, shape index: {0}]   ;;  %s2212_s4 = inlined_call_operand.vmem [shape: f32[512,2], index: 4, kind: output, shape index: {1}]  }
   0x1   :  { %12 = vsyncpa [#allocation3 + $0x1], 0 }
   0x2   :  { %13 = vsyncpa [#allocation6], 0 }
   0x3   :  { %14 = vsyncpa [#allocation4], 0 }
   0x4   :  { %16 = vsyncpa [#allocation4 + $0x1], 0  ;;  %s1637_s15 = smov 0   ;;  %s1639_s16 = smov 0  }
   0x5   :  { %s1641_s17 = smov 0   ;;  %s1643_s18 = smov 0  }
   0x6 LB: > { %s1658_s19 = sadd.s32 4294967295, %s1603_s18   ;;  %s1079_s20 = sadd.s32 4294967294, %s1603_s18   ;;  %s1603_s18 = sphi %s1643_s18, %s2234_s18   ;;  %s1599_s17 = sphi %s1641_s17, %s2233_s17   ;;  %s1595_s16 = sphi %s1639_s16, %s2232_s16   ;;  %s1591_s15 = sphi %s1637_s15, %s2231_s15  }
   0x7   : > { %p42_p0 = scmp.ne.s32.totalorder %s1595_s16, %s1591_s15  ;;  %p2213_p1 = scmp.eq.s32.totalorder %s1658_s19, 0 }
   0x8   : > { %p114_p3 = scmp.eq.s32.totalorder %s1079_s20, 1  ;;  %p1080_p5 = scmp.ge.s32.totalorder %s1603_s18, 1 }
   0x9   : > { %p1667_p4 = por %p2213_p1, %p42_p0  ;;  %p147_p7 = scmp.lt.s32.totalorder %s1603_s18, 3 }
   0xa   : > { %p1672_p6 = por %p114_p3, %p42_p0  ;;  %s1605_s24 = smov [#allocation5]  }
   0xb   : > { %s2217_s21 = scalar_select %p1667_p4, 1, 0 }
   0xc   : > { %s2218_s22 = scalar_select %p1672_p6, 1, 0 }
   0xd   : > { %p1677_p8 = pnand %p1080_p5, %p147_p7  ;;  %s159_s25 = sshll.u32 %s1605_s24, 4  ;;  %s160_s25 = int_to_ptr.vmem [resolvable:$true] %s159_s25 }
   0xe   : > { %s1691_s27 = sadd.s32 1, %s1603_s18   ;;  %s29_s28 = sadd.s32 1, %s1599_s17 }
   0xf   : > { %s2219_s23 = scalar_select %p1677_p8, 1, 0 }
  0x10   : > { %p1428_p9 = pneg %p1677_p8  ;;  %s26_s29 = ssub.s32 %s1603_s18, %s1691_s27 }
  0x11   : > { %s1492_s30 = scalar_lea.vmem %s160_s25, 2048  ;;  %p1500_p5 = scmp.lt.s32.totalorder %s160_s25, %s160_s25 }
  0x12   : > { %p1686_p11 = pnand %p1428_p9, %p2213_p1  ;;  %p1493_p13 = scmp.ne.s32.totalorder %s160_s25, %s1492_s30 }
  0x13   : > { %p1501_p7 = scmp.lt.s32.totalorder %s1492_s30, %s1492_s30 }
  0x14   : > { %p1483_p12 = pneg %p1686_p11 }
  0x15   : > { %p1502_p10 = por %p1501_p7, %p1500_p5 }
  0x16   : > { %p1495_p0 = pnand %p1493_p13, %p1483_p12 }
  0x18   : > { %p1496_p3 = pneg %p1495_p0 }
  0x1a   : > { %p1503_p2 = pnand %p1502_p10, %p1496_p3 }
  0x1c   : > { %1506 = shalt.err (!%p1503_p2)
}
  0x1d   : > { %s1606_s5 = smov 128   ;;  %s1607_s6 = smov 8  }
  0x1e   : > { %1431 = dma.hbm_to_vmem [thread:$0]  (!%p1686_p11), %s2209_s1, 2048, %s160_s25, [#allocation6], %s1606_s5, %s1606_s5, %s1607_s6  }
  0x1f   : > { %p27_p2 = scmp.eq.s32.totalorder %s26_s29, 0  ;;  %p36_p9 = scmp.ne.s32.totalorder %s1599_s17, %s1595_s16 }
  0x20   : > { %p37_p10 = scmp.eq.s32.totalorder %s1603_s18, 0  ;;  %p1441_p12 = scmp.lt.s32.totalorder %s1603_s18, 2 }
  0x21   : > { %s1711_s9 = scalar_select %p27_p2, %s1599_s17, %s29_s28  }
  0x22   : > { %p38_p13 = por %p37_p10, %p36_p9  ;;  %p2221_p0 = scmp.eq.s32.totalorder %s1658_s19, 1 }
  0x23   : > { %s176_s11 = sand.u32 1, %s1599_s17   ;;  %s1131_s12 = sshll.u32 %s1603_s18, 12 }
  0x24   : > { %p1715_p3 = por %p2221_p0, %p36_p9  ;;  %s1083_s13 = sshll.u32 %s176_s11, 8 }
  0x25   : > { %s1724_s24 = scalar_lea.hbm %s2208_s0, %s1131_s12  ;;  %s180_s25 = scalar_lea.vmem [#allocation2], %s1083_s13 }
  0x26   : > { %s2222_s10 = scalar_select %p1715_p3, 1, 0 }
  0x27   : > { %s187_s26 = sshll.u32 %s180_s25, 4  ;;  %p1726_p11 = pnand %p1441_p12, %p38_p13  ;;  %s1730_s26 = int_to_ptr.vmem [resolvable:$true] %s187_s26 }
  0x28   : > { %s1732_s29 = scalar_lea.sflag [#allocation3], %s176_s11  ;;  %s1507_s30 = scalar_lea.hbm %s1724_s24, 4096 }
  0x29   : > { %p1508_p5 = scmp.ne.s32.totalorder %s1724_s24, %s1507_s30  ;;  %p1509_p7 = pneg %p1726_p11 }
  0x2a   : > { %s1512_s12 = scalar_lea.hbm %s2208_s0, 8192  ;;  %p1513_p10 = scmp.lt.s32.totalorder %s1724_s24, %s2208_s0 }
  0x2b   : > { %p1510_p2 = pnand %p1509_p7, %p1508_p5  ;;  %p1514_p12 = scmp.lt.s32.totalorder %s1512_s12, %s1507_s30 }
  0x2d   : > { %p1511_p9 = pneg %p1510_p2  ;;  %p1515_p13 = por %p1514_p12, %p1513_p10 }
  0x2f   : > { %p1516_p0 = pnand %p1515_p13, %p1511_p9 }
  0x31   : > { %1519 = shalt.err (!%p1516_p0)
}
  0x32   : > { %s1520_s11 = scalar_lea.vmem %s1730_s26, 4096  ;;  %s1608_s20 = smov [#allocation2]  }
  0x33   : > { %p1521_p1 = scmp.ne.s32.totalorder %s1730_s26, %s1520_s11  ;;  %s1525_s25 = sshll.u32 %s1608_s20, 4  ;;  %s1526_s25 = int_to_ptr.vmem [resolvable:$false] %s1525_s25 }
  0x34   : > { %s1527_s7 = scalar_lea.vmem %s1526_s25, 8192  ;;  %p1528_p2 = scmp.lt.s32.totalorder %s1730_s26, %s1526_s25 }
  0x35   : > { %p1523_p6 = pnand %p1521_p1, %p1509_p7  ;;  %p1529_p3 = scmp.lt.s32.totalorder %s1527_s7, %s1520_s11 }
  0x37   : > { %p1524_p5 = pneg %p1523_p6  ;;  %p1530_p4 = por %p1529_p3, %p1528_p2 }
  0x39   : > { %p1531_p8 = pnand %p1530_p4, %p1524_p5 }
  0x3b   : > { %1534 = shalt.err (!%p1531_p8)
}
  0x3c   : > { %1435 = dma.hbm_to_vmem [thread:$0]  (!%p1726_p11), %s1724_s24, 4096, %s1730_s26, %s1732_s29, %s1606_s5, %s1606_s5, %s1607_s6  }
  0x3d   : > { %p2224_p1 = scmp.ne.s32.totalorder %s2219_s23, 0 }
  0x3e   : > { %s1759_s30 = sand.u32 (!%p2224_p1), 1, %s1595_s16   ;;  %p2225_p4 = scmp.ne.s32.totalorder (!%p2224_p1), %s2217_s21, 0 }
  0x3f   : > { %199 = sbr.rel (%p2224_p1) target bundleno = 573 (0x23d), region = 32  ;;  %s1087_s8 = sshll.u32 (!%p2224_p1), %s1759_s30, 8 }
  0x40   : > { %s202_s12 = scalar_lea.sflag (!%p2224_p1), [#allocation3], %s1759_s30  ;;  %s1763_s13 = scalar_lea.vmem (!%p2224_p1), [#allocation2], %s1087_s8 }
  0x44   : > { %1578 = dma.done.wait (%p2225_p4), %s202_s12, 4096  }
  0x45   : > { %1580 = vsyncadd (%p2225_p4), %s202_s12, 4294963200  ;;  %p2226_p6 = scmp.eq.s32.totalorder %s1658_s19, 0 }
  0x47   : > { %1582 = dma.done.wait (%p2226_p6), [#allocation6], 2048   ;;  %p2227_p8 = pmov %p2226_p6 }
  0x48   : > { %v294_v0 = vld [vmem:[#allocation5 + $0x78] sm:$0xff]  ;;  %v293_v1 = vld [vmem:[#allocation5 + $0x70] sm:$0xff]  ;;  %v292_v2 = vld [vmem:[#allocation5 + $0x68] sm:$0xff]  ;;  %s1089_s5 = sshll.u32 %s1759_s30, 7  ;;  %s1090_s28 = sshll.u32 %s1658_s19, 5 }
  0x49   : > { %1584 = vsyncadd (%p2227_p8), [#allocation6], 4294965248  ;;  %1308 = vmatprep.subr.mxu0 %v294_v0  ;;  %1388 = vmatprep.subr.mxu1 %v294_v0  ;;  %v291_v3 = vld [vmem:[#allocation5 + $0x60] sm:$0xff]  ;;  %v290_v4 = vld [vmem:[#allocation5 + $0x58] sm:$0xff]  ;;  %s1820_s26 = scalar_lea.vmem [#allocation7], %s1089_s5  ;;  %p242_p3 = scmp.lt.s32.totalorder %s1090_s28, 63 }
  0x4a   : > { %1309 = vmatpush3.msra.mxu0 %v294_v0  ;;  %1404 = vmatpush3.msra.mxu1 %v294_v0  ;;  %v289_v5 = vld [vmem:[#allocation5 + $0x50] sm:$0xff]  ;;  %v288_v6 = vld [vmem:[#allocation5 + $0x48] sm:$0xff]  ;;  %v287_v7 = vld [vmem:[#allocation5 + $0x40] sm:$0xff]  ;;  %s1164_s29 = sshll.u32 %s1658_s19, 11  ;;  %s967_s14 = sshll.u32 %s1820_s26, 4  ;;  %s2061_s14 = int_to_ptr.vmem [resolvable:$true] %s967_s14 }
  0x4b   : > { %1310 = vmatprep.subr.mxu0 %v293_v1  ;;  %1389 = vmatprep.subr.mxu1 %v293_v1  ;;  %v286_v8 = vld [vmem:[#allocation5 + $0x38] sm:$0xff]  ;;  %v285_v9 = vld [vmem:[#allocation5 + $0x30] sm:$0xff]  ;;  %v284_v10 = vld [vmem:[#allocation5 + $0x28] sm:$0xff]  ;;  %s2236_s28 = smov (!%p242_p3, %s1090_s28), 63  ;;  %s2059_s25 = scalar_lea.hbm %s2211_s3, %s1164_s29 }
  0x4c   : > { %1311 = vmatpush3.msra.mxu0 %v293_v1  ;;  %1405 = vmatpush3.msra.mxu1 %v293_v1  ;;  %v283_v11 = vld [vmem:[#allocation5 + $0x20] sm:$0xff]  ;;  %v282_v12 = vld [vmem:[#allocation5 + $0x18] sm:$0xff]  ;;  %v281_v13 = vld [vmem:[#allocation5 + $0x10] sm:$0xff]  ;;  %s1091_s7 = sshll.u32 %s2236_s28, 3  ;;  %s949_s8 = scalar_lea.sflag [#allocation4], %s1759_s30 }
  0x4d   : > { %1312 = vmatprep.subr.mxu0 %v292_v2  ;;  %1390 = vmatprep.subr.mxu1 %v292_v2  ;;  %v280_v14 = vld [vmem:[#allocation5 + $0x8] sm:$0xff]  ;;  %v279_v15 = vld [vmem:[#allocation5] sm:$0xff]  ;;  %v249_v20 = vld [vmem:[%s1763_s13 + $0x10] sm:$0xff]  ;;  %s1535_s12 = scalar_lea.vmem %s2061_s14, 2048  ;;  %p2228_p7 = scmp.ne.s32.totalorder %s2222_s10, 0 }
  0x4e   : > { %1313 = vmatpush3.msra.mxu0 %v292_v2  ;;  %1406 = vmatpush3.msra.mxu1 %v292_v2  ;;  %v247_v16 = vld [vmem:[%s1763_s13] sm:$0xff]  ;;  %v248_v18 = vld [vmem:[%s1763_s13 + $0x8] sm:$0xff]  ;;  %v265_v21 = vld [vmem:[%s1763_s13 + $0x90] sm:$0xff]  ;;  %p1536_p11 = scmp.ne.s32.totalorder %s2061_s14, %s1535_s12  ;;  %s1609_s19 = smov [#allocation7]  }
  0x4f   : > { %1314 = vmatprep.subr.mxu0 %v291_v3  ;;  %1391 = vmatprep.subr.mxu1 %v291_v3  ;;  %v263_v17 = vld [vmem:[%s1763_s13 + $0x80] sm:$0xff]  ;;  %v264_v19 = vld [vmem:[%s1763_s13 + $0x88] sm:$0xff]  ;;  %v250_v22 = vld [vmem:[%s1763_s13 + $0x18] sm:$0xff] }
  0x50   : > { %1315 = vmatpush3.msra.mxu0 %v291_v3  ;;  %1407 = vmatpush3.msra.mxu1 %v291_v3  ;;  %v266_v23 = vld [vmem:[%s1763_s13 + $0x98] sm:$0xff]  ;;  %v251_v24 = vld [vmem:[%s1763_s13 + $0x20] sm:$0xff]  ;;  %v252_v26 = vld [vmem:[%s1763_s13 + $0x28] sm:$0xff]  ;;  %p1537_p9 = pnand %p1536_p11, %p2228_p7 }
  0x51   : > { %1316 = vmatprep.subr.mxu0 %v290_v4  ;;  %1392 = vmatprep.subr.mxu1 %v290_v4  ;;  %v267_v25 = vld [vmem:[%s1763_s13 + $0xa0] sm:$0xff]  ;;  %v268_v27 = vld [vmem:[%s1763_s13 + $0xa8] sm:$0xff]  ;;  %v253_v28 = vld [vmem:[%s1763_s13 + $0x30] sm:$0xff] }
  0x52   : > { %1317 = vmatpush3.msra.mxu0 %v290_v4  ;;  %1408 = vmatpush3.msra.mxu1 %v290_v4  ;;  %v269_v29 = vld [vmem:[%s1763_s13 + $0xb0] sm:$0xff]  ;;  %v254_v30 = vld [vmem:[%s1763_s13 + $0x38] sm:$0xff]  ;;  %v255_v32 = vld [vmem:[%s1763_s13 + $0x40] sm:$0xff]  ;;  %p1538_p10 = pneg %p1537_p9 }
  0x53   : > { %1318 = vmatprep.subr.mxu0 %v289_v5  ;;  %1393 = vmatprep.subr.mxu1 %v289_v5  ;;  %v270_v31 = vld [vmem:[%s1763_s13 + $0xb8] sm:$0xff]  ;;  %v271_v33 = vld [vmem:[%s1763_s13 + $0xc0] sm:$0xff]  ;;  %v256_v34 = vld [vmem:[%s1763_s13 + $0x48] sm:$0xff] }
  0x54   : > { %1319 = vmatpush3.msra.mxu0 %v289_v5  ;;  %1409 = vmatpush3.msra.mxu1 %v289_v5  ;;  %v272_v35 = vld [vmem:[%s1763_s13 + $0xc8] sm:$0xff]  ;;  %v257_v36 = vld [vmem:[%s1763_s13 + $0x50] sm:$0xff]  ;;  %v258_v38 = vld [vmem:[%s1763_s13 + $0x58] sm:$0xff] }
  0x55   : > { %1320 = vmatprep.subr.mxu0 %v288_v6  ;;  %1394 = vmatprep.subr.mxu1 %v288_v6  ;;  %v273_v37 = vld [vmem:[%s1763_s13 + $0xd0] sm:$0xff]  ;;  %v274_v39 = vld [vmem:[%s1763_s13 + $0xd8] sm:$0xff]  ;;  %v259_v40 = vld [vmem:[%s1763_s13 + $0x60] sm:$0xff] }
  0x56   : > { %1321 = vmatpush3.msra.mxu0 %v288_v6  ;;  %1410 = vmatpush3.msra.mxu1 %v288_v6  ;;  %v275_v41 = vld [vmem:[%s1763_s13 + $0xe0] sm:$0xff]  ;;  %v260_v42 = vld [vmem:[%s1763_s13 + $0x68] sm:$0xff]  ;;  %v261_v44 = vld [vmem:[%s1763_s13 + $0x70] sm:$0xff] }
  0x57   : > { %1322 = vmatprep.subr.mxu0 %v287_v7  ;;  %1395 = vmatprep.subr.mxu1 %v287_v7  ;;  %v276_v43 = vld [vmem:[%s1763_s13 + $0xe8] sm:$0xff]  ;;  %v277_v45 = vld [vmem:[%s1763_s13 + $0xf0] sm:$0xff]  ;;  %v262_v46 = vld [vmem:[%s1763_s13 + $0x78] sm:$0xff] }
  0x58   : > { %1323 = vmatpush3.msra.mxu0 %v287_v7  ;;  %1411 = vmatpush3.msra.mxu1 %v287_v7  ;;  %v278_v47 = vld [vmem:[%s1763_s13 + $0xf8] sm:$0xff]  ;;  %v1808_v48 = vld [vmem:[%s2210_s2] ss:$0 sm:$0xff]  ;;  %v1816_v55 = vld [vmem:[%s2210_s2 + $0x1] ss:$0 sm:$0xff]  ;;  %s1539_s13 = sshll.u32 %s1609_s19, 4  ;;  %s1540_s13 = int_to_ptr.vmem [resolvable:$false] %s1539_s13 }
  0x59   : > { %1324 = vmatprep.subr.mxu0 %v286_v8  ;;  %1396 = vmatprep.subr.mxu1 %v286_v8  ;;  %s1541_s21 = scalar_lea.vmem %s1540_s13, 4096  ;;  %p1542_p12 = scmp.lt.s32.totalorder %s2061_s14, %s1540_s13 }
  0x5a   : > { %1325 = vmatpush3.msra.mxu0 %v286_v8  ;;  %1412 = vmatpush3.msra.mxu1 %v286_v8  ;;  %p1543_p13 = scmp.lt.s32.totalorder %s1541_s21, %s1535_s12 }
  0x5b   : > { %1326 = vmatprep.subr.mxu0 %v285_v9  ;;  %1397 = vmatprep.subr.mxu1 %v285_v9 }
  0x5c   : > { %1327 = vmatpush3.msra.mxu0 %v285_v9  ;;  %1413 = vmatpush3.msra.mxu1 %v285_v9  ;;  %p1544_p0 = por %p1543_p13, %p1542_p12 }
  0x5d   : > { %1328 = vmatprep.subr.mxu0 %v284_v10  ;;  %1398 = vmatprep.subr.mxu1 %v284_v10 }
  0x5e   : > { %1329 = vmatpush3.msra.mxu0 %v284_v10  ;;  %1414 = vmatpush3.msra.mxu1 %v284_v10  ;;  %p1545_p5 = pnand %p1544_p0, %p1538_p10 }
  0x5f   : > { %1330 = vmatprep.subr.mxu0 %v283_v11  ;;  %1399 = vmatprep.subr.mxu1 %v283_v11 }
  0x60   : > { %1331 = vmatpush3.msra.mxu0 %v283_v11  ;;  %1415 = vmatpush3.msra.mxu1 %v283_v11 }
  0x61   : > { %1332 = vmatprep.subr.mxu0 %v282_v12  ;;  %1400 = vmatprep.subr.mxu1 %v282_v12 }
  0x62   : > { %1333 = vmatpush3.msra.mxu0 %v282_v12  ;;  %1416 = vmatpush3.msra.mxu1 %v282_v12 }
  0x63   : > { %1334 = vmatprep.subr.mxu0 %v281_v13  ;;  %1401 = vmatprep.subr.mxu1 %v281_v13 }
  0x64   : > { %1335 = vmatpush3.msra.mxu0 %v281_v13  ;;  %1417 = vmatpush3.msra.mxu1 %v281_v13 }
  0x65   : > { %1336 = vmatprep.subr.mxu0 %v280_v14  ;;  %1402 = vmatprep.subr.mxu1 %v280_v14 }
  0x66   : > { %1337 = vmatpush3.msra.mxu0 %v280_v14  ;;  %1418 = vmatpush3.msra.mxu1 %v280_v14 }
  0x67   : > { %1338 = vmatprep.subr.mxu0 %v279_v15  ;;  %1403 = vmatprep.subr.mxu1 %v279_v15 }
  0x68   : > { %1339 = vmatpush3.msra.mxu0 %v279_v15  ;;  %1419 = vmatpush3.msra.mxu1 %v279_v15 }
  0x69   : > { %1340 = vmatprep.mubr.f32.mxu0 %v247_v16  ;;  %1364 = vmatprep.mubr.f32.mxu1 %v263_v17 }
  0x6a   : > { %1341 = vmatmul.mubr.f32.vlgmr.msra.gmra.mxu0 %v248_v18  ;;  %1365 = vmatmul.mubr.f32.vlgmr.msra.gmra.mxu1 %v264_v19 }
  0x6b   : > { %1343 = vmatprep.mubr.f32.mxu0 %v249_v20  ;;  %1367 = vmatprep.mubr.f32.mxu1 %v265_v21 }
  0x6e   : > { %1344 = vmatmul.mubr.f32.gmra.mxu0 %v250_v22  ;;  %1368 = vmatmul.mubr.f32.gmra.mxu1 %v266_v23 }
  0x6f   : > { %1346 = vmatprep.mubr.f32.mxu0 %v251_v24  ;;  %1370 = vmatprep.mubr.f32.mxu1 %v267_v25 }
  0x72   : > { %1347 = vmatmul.mubr.f32.gmra.mxu0 %v252_v26  ;;  %1371 = vmatmul.mubr.f32.gmra.mxu1 %v268_v27 }
  0x73   : > { %1349 = vmatprep.mubr.f32.mxu0 %v253_v28  ;;  %1373 = vmatprep.mubr.f32.mxu1 %v269_v29 }
  0x76   : > { %1350 = vmatmul.mubr.f32.gmra.mxu0 %v254_v30  ;;  %1374 = vmatmul.mubr.f32.gmra.mxu1 %v270_v31 }
  0x77   : > { %1352 = vmatprep.mubr.f32.mxu0 %v255_v32  ;;  %1376 = vmatprep.mubr.f32.mxu1 %v271_v33 }
  0x7a   : > { %1353 = vmatmul.mubr.f32.gmra.mxu0 %v256_v34  ;;  %1377 = vmatmul.mubr.f32.gmra.mxu1 %v272_v35 }
  0x7b   : > { %1355 = vmatprep.mubr.f32.mxu0 %v257_v36  ;;  %1379 = vmatprep.mubr.f32.mxu1 %v273_v37 }
  0x7e   : > { %1356 = vmatmul.mubr.f32.gmra.mxu0 %v258_v38  ;;  %1380 = vmatmul.mubr.f32.gmra.mxu1 %v274_v39 }
  0x7f   : > { %1358 = vmatprep.mubr.f32.mxu0 %v259_v40  ;;  %1382 = vmatprep.mubr.f32.mxu1 %v275_v41 }
  0x82   : > { %1359 = vmatmul.mubr.f32.gmra.mxu0 %v260_v42  ;;  %1383 = vmatmul.mubr.f32.gmra.mxu1 %v276_v43 }
  0x83   : > { %1361 = vmatprep.mubr.f32.mxu0 %v261_v44  ;;  %1385 = vmatprep.mubr.f32.mxu1 %v277_v45 }
  0x86   : > { %1362 = vmatmul.mubr.f32.gmra.mxu0 %v262_v46  ;;  %1386 = vmatmul.mubr.f32.gmra.mxu1 %v278_v47 }
 0x12a   : > { %v1342_v49 = vpop.f32.mrf.mxu0  ;;  %v1366_v50 = vpop.f32.mrf.mxu1 }
 0x12b   : > { %v702_v51 = vmul.f32 %v1366_v50, %v1808_v48  ;;  %v686_v52 = vmul.f32 %v1342_v49, %v1808_v48  ;;  %v787_v60 = vmul.f32 %v1342_v49, %v1816_v55  ;;  %v803_v4 = vmul.f32 %v1366_v50, %v1816_v55 }
 0x12c   : > { %v361_v53 = vpop.f32.mrf.mxu0  ;;  %v441_v54 = vpop.f32.mrf.mxu1 }
 0x12d   : > { %v1168_v56 = vpack.c.bf16 %v1342_v49, %v361_v53  ;;  %v1208_v57 = vpack.c.bf16 %v1366_v50, %v441_v54  ;;  %751 = vadd.xlane.f32.xlu1 %v702_v51  ;;  %719 = vadd.xlane.f32.xlu0 %v686_v52  ;;  %v685_v61 = vmul.f32 %v1808_v48, %v361_v53 }
 0x12e   : > { %v1345_v58 = vpop.f32.mrf.mxu0  ;;  %v1818_v59 = vpop.f32.mrf.mxu1  ;;  %v701_v5 = vmul.f32 %v1808_v48, %v441_v54  ;;  %v786_v13 = vmul.f32 %v1816_v55, %v361_v53  ;;  %v802_v21 = vmul.f32 %v1816_v55, %v441_v54 }
 0x12f   : > { %1169 = vst [vmem:[%s1820_s26] sm:$0xff] %v1168_v56   ;;  %1252 = vst [vmem:[%s1820_s26 + $0x40] sm:$0xff] %v1208_v57   ;;  %v688_v8 = vmul.f32 %v1345_v58, %v1808_v48  ;;  %v704_v16 = vmul.f32 %v1818_v59, %v1808_v48  ;;  %v789_v26 = vmul.f32 %v1345_v58, %v1816_v55 }
 0x130   : > { %v1826_v62 = vpop.f32.mrf.mxu0  ;;  %v1828_v63 = vpop.f32.mrf.mxu1  ;;  %v805_v37 = vmul.f32 %v1818_v59, %v1816_v55 }
 0x131   : > { %820 = vadd.xlane.f32.xlu1 %v787_v60  ;;  %717 = vadd.xlane.f32.xlu0 %v685_v61  ;;  %v1173_v0 = vpack.c.bf16 %v1345_v58, %v1826_v62  ;;  %v1213_v1 = vpack.c.bf16 %v1818_v59, %v1828_v63  ;;  %v703_v29 = vmul.f32 %v1808_v48, %v1828_v63 }
 0x132   : > { %v1833_v2 = vpop.f32.mrf.mxu0  ;;  %v1835_v3 = vpop.f32.mrf.mxu1  ;;  %v788_v38 = vmul.f32 %v1816_v55, %v1826_v62  ;;  %v804_v47 = vmul.f32 %v1816_v55, %v1828_v63  ;;  %v687_v54 = vmul.f32 %v1808_v48, %v1826_v62 }
 0x133   : > { %1245 = vst [vmem:[%s1820_s26 + $0x8] sm:$0xff] %v1173_v0   ;;  %1253 = vst [vmem:[%s1820_s26 + $0x48] sm:$0xff] %v1213_v1  }
 0x134   : > { %v1841_v6 = vpop.f32.mrf.mxu0  ;;  %v1843_v7 = vpop.f32.mrf.mxu1 }
 0x135   : > { %852 = vadd.xlane.f32.xlu1 %v803_v4  ;;  %749 = vadd.xlane.f32.xlu0 %v701_v5  ;;  %v1178_v9 = vpack.c.bf16 %v1833_v2, %v1841_v6  ;;  %v1218_v10 = vpack.c.bf16 %v1835_v3, %v1843_v7 }
 0x136   : > { %v1850_v11 = vpop.f32.mrf.mxu0  ;;  %v1852_v12 = vpop.f32.mrf.mxu1 }
 0x137   : > { %1246 = vst [vmem:[%s1820_s26 + $0x10] sm:$0xff] %v1178_v9   ;;  %1254 = vst [vmem:[%s1820_s26 + $0x50] sm:$0xff] %v1218_v10  }
 0x138   : > { %v1857_v14 = vpop.f32.mrf.mxu0  ;;  %v1859_v15 = vpop.f32.mrf.mxu1 }
 0x139   : > { %818 = vadd.xlane.f32.xlu0 %v786_v13  ;;  %723 = vadd.xlane.f32.xlu1 %v688_v8  ;;  %v1183_v17 = vpack.c.bf16 %v1850_v11, %v1857_v14  ;;  %v1223_v18 = vpack.c.bf16 %v1852_v12, %v1859_v15 }
 0x13a   : > { %v1867_v19 = vpop.f32.mrf.mxu0  ;;  %v1869_v20 = vpop.f32.mrf.mxu1 }
 0x13b   : > { %1247 = vst [vmem:[%s1820_s26 + $0x18] sm:$0xff] %v1183_v17   ;;  %1255 = vst [vmem:[%s1820_s26 + $0x58] sm:$0xff] %v1223_v18   ;;  %v690_v17 = vmul.f32 %v1833_v2, %v1808_v48  ;;  %v689_v18 = vmul.f32 %v1808_v48, %v1841_v6 }
 0x13c   : > { %v1874_v22 = vpop.f32.mrf.mxu0  ;;  %v1876_v23 = vpop.f32.mrf.mxu1 }
 0x13d   : > { %850 = vadd.xlane.f32.xlu0 %v802_v21  ;;  %755 = vadd.xlane.f32.xlu1 %v704_v16  ;;  %v1188_v24 = vpack.c.bf16 %v1867_v19, %v1874_v22  ;;  %v1228_v25 = vpack.c.bf16 %v1869_v20, %v1876_v23  ;;  %v706_v21 = vmul.f32 %v1835_v3, %v1808_v48 }
 0x13e   : > { %v1883_v27 = vpop.f32.mrf.mxu0  ;;  %v1381_v28 = vpop.f32.mrf.mxu1 }
 0x13f   : > { %1248 = vst [vmem:[%s1820_s26 + $0x20] sm:$0xff] %v1188_v24   ;;  %1256 = vst [vmem:[%s1820_s26 + $0x60] sm:$0xff] %v1228_v25   ;;  %v1890_v30 = vmul.f32 %v1381_v28, %v1808_v48  ;;  %v1894_v31 = vmul.f32 %v1883_v27, %v1816_v55  ;;  %v1897_v32 = vmul.f32 %v1381_v28, %v1816_v55 }
 0x140   : > { %v1899_v33 = vpop.f32.mrf.mxu0  ;;  %v1901_v34 = vpop.f32.mrf.mxu1  ;;  %v705_v24 = vmul.f32 %v1808_v48, %v1843_v7  ;;  %v791_v25 = vmul.f32 %v1833_v2, %v1816_v55  ;;  %v708_v2 = vmul.f32 %v1852_v12, %v1808_v48 }
 0x141   : > { %753 = vadd.xlane.f32.xlu0 %v703_v29  ;;  %824 = vadd.xlane.f32.xlu1 %v789_v26  ;;  %v1193_v35 = vpack.c.bf16 %v1883_v27, %v1899_v33  ;;  %v1233_v36 = vpack.c.bf16 %v1381_v28, %v1901_v34  ;;  %v1912_v39 = vmul.f32 %v1816_v55, %v1899_v33 }
 0x142   : > { %v1360_v40 = vpop.f32.mrf.mxu0  ;;  %v1916_v41 = vmul.f32 %v1816_v55, %v1901_v34  ;;  %v1384_v42 = vpop.f32.mrf.mxu1  ;;  %v790_v26 = vmul.f32 %v1816_v55, %v1841_v6  ;;  %v807_v28 = vmul.f32 %v1835_v3, %v1816_v55  ;;  %v806_v29 = vmul.f32 %v1816_v55, %v1843_v7 }
 0x143   : > { %1249 = vst [vmem:[%s1820_s26 + $0x28] sm:$0xff] %v1193_v35   ;;  %1257 = vst [vmem:[%s1820_s26 + $0x68] sm:$0xff] %v1233_v36   ;;  %v1921_v43 = vmul.f32 %v1360_v40, %v1808_v48  ;;  %v1924_v44 = vmul.f32 %v1384_v42, %v1808_v48  ;;  %v1927_v45 = vmul.f32 %v1360_v40, %v1816_v55 }
 0x144   : > { %v1930_v46 = vmul.f32 %v1384_v42, %v1816_v55  ;;  %v421_v49 = vpop.f32.mrf.mxu0  ;;  %v501_v50 = vpop.f32.mrf.mxu1  ;;  %v692_v35 = vmul.f32 %v1850_v11, %v1808_v48  ;;  %v691_v36 = vmul.f32 %v1808_v48, %v1857_v14  ;;  %v707_v6 = vmul.f32 %v1808_v48, %v1859_v15 }
 0x145   : > { %856 = vadd.xlane.f32.xlu1 %v805_v37  ;;  %822 = vadd.xlane.f32.xlu0 %v788_v38  ;;  %v1198_v51 = vpack.c.bf16 %v1360_v40, %v421_v49  ;;  %v1238_v52 = vpack.c.bf16 %v1384_v42, %v501_v50  ;;  %v1935_v53 = vmul.f32 %v1808_v48, %v421_v49 }
 0x146   : > { %v1940_v56 = vmul.f32 %v1808_v48, %v501_v50  ;;  %v1943_v57 = vmul.f32 %v1816_v55, %v421_v49  ;;  %v1363_v58 = vpop.f32.mrf.mxu0  ;;  %v1946_v59 = vmul.f32 %v1816_v55, %v501_v50  ;;  %v1387_v60 = vpop.f32.mrf.mxu1  ;;  %v793_v3 = vmul.f32 %v1850_v11, %v1816_v55 }
 0x147   : > { %1250 = vst [vmem:[%s1820_s26 + $0x30] sm:$0xff] %v1198_v51   ;;  %1258 = vst [vmem:[%s1820_s26 + $0x70] sm:$0xff] %v1238_v52   ;;  %v1951_v61 = vmul.f32 %v1363_v58, %v1808_v48  ;;  %v1954_v63 = vmul.f32 %v1387_v60, %v1808_v48  ;;  %v1957_v62 = vmul.f32 %v1363_v58, %v1816_v55 }
 0x148   : > { %v1960_v0 = vmul.f32 %v1387_v60, %v1816_v55  ;;  %v431_v1 = vpop.f32.mrf.mxu0  ;;  %v511_v4 = vpop.f32.mrf.mxu1  ;;  %v792_v7 = vmul.f32 %v1816_v55, %v1857_v14  ;;  %v809_v37 = vmul.f32 %v1852_v12, %v1816_v55  ;;  %v808_v38 = vmul.f32 %v1816_v55, %v1859_v15 }
 0x149   : > { %854 = vadd.xlane.f32.xlu0 %v804_v47  ;;  %721 = vadd.xlane.f32.xlu1 %v687_v54  ;;  %v1203_v5 = vpack.c.bf16 %v1363_v58, %v431_v1  ;;  %v1243_v8 = vpack.c.bf16 %v1387_v60, %v511_v4  ;;  %v1963_v9 = vmul.f32 %v1808_v48, %v431_v1 }
 0x14a   : > { %v1966_v10 = vmul.f32 %v1808_v48, %v511_v4  ;;  %v1969_v13 = vmul.f32 %v1816_v55, %v431_v1  ;;  %v1972_v16 = vmul.f32 %v1816_v55, %v511_v4  ;;  %v694_v40 = vmul.f32 %v1867_v19, %v1808_v48 }
 0x14b   : > { %1251 = vst [vmem:[%s1820_s26 + $0x38] sm:$0xff] %v1203_v5   ;;  %1259 = vst [vmem:[%s1820_s26 + $0x78] sm:$0xff] %v1243_v8   ;;  %v693_v42 = vmul.f32 %v1808_v48, %v1874_v22  ;;  %v710_v11 = vmul.f32 %v1869_v20, %v1808_v48  ;;  %v709_v14 = vmul.f32 %v1808_v48, %v1876_v23 }
 0x14c   : > { %v795_v12 = vmul.f32 %v1867_v19, %v1816_v55  ;;  %v794_v15 = vmul.f32 %v1816_v55, %v1874_v22  ;;  %v811_v47 = vmul.f32 %v1869_v20, %v1816_v55  ;;  %v810_v49 = vmul.f32 %v1816_v55, %v1876_v23 }
 0x14d   : > { %727 = vadd.xlane.f32.xlu1 %v690_v17  ;;  %725 = vadd.xlane.f32.xlu0 %v689_v18  ;;  %v696_v50 = vmul.f32 %v1883_v27, %v1808_v48  ;;  %v695_v51 = vmul.f32 %v1808_v48, %v1899_v33  ;;  %v711_v19 = vmul.f32 %v1808_v48, %v1901_v34 }
 0x151   : > { %759 = vadd.xlane.f32.xlu1 %v706_v21  ;;  %757 = vadd.xlane.f32.xlu0 %v705_v24 }
 0x155   : > { %828 = vadd.xlane.f32.xlu1 %v791_v25  ;;  %826 = vadd.xlane.f32.xlu0 %v790_v26 }
 0x159   : > { %860 = vadd.xlane.f32.xlu1 %v807_v28  ;;  %858 = vadd.xlane.f32.xlu0 %v806_v29 }
 0x15d   : > { %731 = vadd.xlane.f32.xlu1 %v692_v35  ;;  %729 = vadd.xlane.f32.xlu0 %v691_v36 }
 0x161   : > { %763 = vadd.xlane.f32.xlu1 %v708_v2  ;;  %761 = vadd.xlane.f32.xlu0 %v707_v6 }
 0x165   : > { %832 = vadd.xlane.f32.xlu1 %v793_v3  ;;  %830 = vadd.xlane.f32.xlu0 %v792_v7 }
 0x169   : > { %864 = vadd.xlane.f32.xlu1 %v809_v37  ;;  %862 = vadd.xlane.f32.xlu0 %v808_v38 }
 0x16d   : > { %735 = vadd.xlane.f32.xlu1 %v694_v40  ;;  %733 = vadd.xlane.f32.xlu0 %v693_v42 }
 0x171   : > { %767 = vadd.xlane.f32.xlu1 %v710_v11  ;;  %765 = vadd.xlane.f32.xlu0 %v709_v14 }
 0x175   : > { %836 = vadd.xlane.f32.xlu1 %v795_v12  ;;  %834 = vadd.xlane.f32.xlu0 %v794_v15 }
 0x179   : > { %868 = vadd.xlane.f32.xlu1 %v811_v47  ;;  %866 = vadd.xlane.f32.xlu0 %v810_v49 }
 0x17d   : > { %739 = vadd.xlane.f32.xlu1 %v696_v50  ;;  %737 = vadd.xlane.f32.xlu0 %v695_v51 }
 0x181   : > { %771 = vadd.xlane.f32.xlu1 %v1890_v30  ;;  %769 = vadd.xlane.f32.xlu0 %v711_v19 }
 0x185   : > { %840 = vadd.xlane.f32.xlu1 %v1894_v31  ;;  %838 = vadd.xlane.f32.xlu0 %v1912_v39 }
 0x189   : > { %872 = vadd.xlane.f32.xlu1 %v1897_v32  ;;  %870 = vadd.xlane.f32.xlu0 %v1916_v41 }
 0x18d   : > { %743 = vadd.xlane.f32.xlu1 %v1921_v43  ;;  %741 = vadd.xlane.f32.xlu0 %v1935_v53 }
 0x191   : > { %775 = vadd.xlane.f32.xlu1 %v1924_v44  ;;  %773 = vadd.xlane.f32.xlu0 %v1940_v56 }
 0x195   : > { %844 = vadd.xlane.f32.xlu1 %v1927_v45  ;;  %842 = vadd.xlane.f32.xlu0 %v1943_v57 }
 0x199   : > { %876 = vadd.xlane.f32.xlu1 %v1930_v46  ;;  %874 = vadd.xlane.f32.xlu0 %v1946_v59 }
 0x19d   : > { %747 = vadd.xlane.f32.xlu1 %v1951_v61  ;;  %745 = vadd.xlane.f32.xlu0 %v1963_v9 }
 0x1a1   : > { %779 = vadd.xlane.f32.xlu1 %v1954_v63  ;;  %777 = vadd.xlane.f32.xlu0 %v1966_v10 }
 0x1a5   : > { %848 = vadd.xlane.f32.xlu1 %v1957_v62  ;;  %846 = vadd.xlane.f32.xlu0 %v1969_v13 }
 0x1a9   : > { %880 = vadd.xlane.f32.xlu1 %v1960_v0  ;;  %878 = vadd.xlane.f32.xlu0 %v1972_v16 }
 0x1b6   : > { %v752_v48 = vpop.xlane.xlu1 %751  ;;  %v720_v55 = vpop.xlane.xlu0 %719 }
 0x1b7   : > { %1548 = shalt.err (!%p1545_p5)
}
 0x1b8   : > { %s1549_s23 = scalar_lea.hbm %s2059_s25, 2048  ;;  %s1553_s24 = scalar_lea.hbm %s2211_s3, 4096 }
 0x1b9   : > { %p1550_p2 = scmp.ne.s32.totalorder %s2059_s25, %s1549_s23  ;;  %p1554_p6 = scmp.lt.s32.totalorder %s2059_s25, %s2211_s3 }
 0x1ba   : > { %p1555_p8 = scmp.lt.s32.totalorder %s1553_s24, %s1549_s23 }
 0x1bb   : > { %p1551_p1 = pnand %p1550_p2, %p2228_p7 }
 0x1bc   : > { %p1556_p3 = por %p1555_p8, %p1554_p6 }
 0x1bd   : > { %p1552_p4 = pneg %p1551_p1 }
 0x1bf   : > { %p1557_p11 = pnand %p1556_p3, %p1552_p4 }
 0x1c1   : > { %1560 = shalt.err (!%p1557_p11)
}
 0x1c2   : > { %s1610_s11 = smov 64   ;;  %s1611_s20 = smov 4   ;;  %vm882_vm0 = vcmask 7168   ;;  %vm915_vm1 = vcmask 15360   ;;  %v821_v20 = vpop.xlane.xlu1 %820  ;;  %v718_v22 = vpop.xlane.xlu0 %717 }
 0x1c3   : > { %1426 = dma.vmem_to_hbm [thread:$0]  (%p2228_p7), %s2061_s14, 2048, %s2059_s25, %s949_s8, %s1610_s11, %s1610_s11, %s1611_s20   ;;  %v884_v23 = vsel %vm882_vm0, %v720_v55, %v821_v20 }
 0x1c4   : > { %s2092_s13 = scalar_lea.vmem %s2212_s4, %s1091_s7 }
 0x1c5   : > { %917 = vst.msk [vmem:[%s2092_s13 + $0x8] sm:$0xff] %vm915_vm1, %v884_v23 }
 0x1c6   : > { %v853_v27 = vpop.xlane.xlu1 %852  ;;  %v750_v30 = vpop.xlane.xlu0 %749 }
 0x1c7   : > { %v900_v31 = vsel %vm882_vm0, %v752_v48, %v853_v27 }
 0x1c8   : > { %933 = vst.msk [vmem:[%s2092_s13 + $0x88] sm:$0xff] %vm915_vm1, %v900_v31 }
 0x1ca   : > { %v819_v32 = vpop.xlane.xlu0 %818  ;;  %v724_v33 = vpop.xlane.xlu1 %723 }
 0x1cb   : > { %v883_v34 = vsel %vm882_vm0, %v718_v22, %v819_v32 }
 0x1cc   : > { %916 = vst.msk [vmem:[%s2092_s13] sm:$0xff] %vm915_vm1, %v883_v34 }
 0x1ce   : > { %v851_v39 = vpop.xlane.xlu0 %850  ;;  %v756_v41 = vpop.xlane.xlu1 %755 }
 0x1cf   : > { %v899_v43 = vsel %vm882_vm0, %v750_v30, %v851_v39 }
 0x1d0   : > { %932 = vst.msk [vmem:[%s2092_s13 + $0x80] sm:$0xff] %vm915_vm1, %v899_v43 }
 0x1d2   : > { %v754_v44 = vpop.xlane.xlu0 %753  ;;  %v825_v45 = vpop.xlane.xlu1 %824 }
 0x1d3   : > { %v886_v46 = vsel %vm882_vm0, %v724_v33, %v825_v45 }
 0x1d4   : > { %919 = vst.msk [vmem:[%s2092_s13 + $0x18] sm:$0xff] %vm915_vm1, %v886_v46 }
 0x1d6   : > { %v857_v52 = vpop.xlane.xlu1 %856  ;;  %v823_v53 = vpop.xlane.xlu0 %822 }
 0x1d7   : > { %v902_v54 = vsel %vm882_vm0, %v756_v41, %v857_v52 }
 0x1d8   : > { %935 = vst.msk [vmem:[%s2092_s13 + $0x98] sm:$0xff] %vm915_vm1, %v902_v54 }
 0x1da   : > { %v855_v56 = vpop.xlane.xlu0 %854  ;;  %v722_v57 = vpop.xlane.xlu1 %721 }
 0x1db   : > { %v901_v58 = vsel %vm882_vm0, %v754_v44, %v855_v56  ;;  %v885_v59 = vsel %vm882_vm0, %v722_v57, %v823_v53 }
 0x1dc   : > { %934 = vst.msk [vmem:[%s2092_s13 + $0x90] sm:$0xff] %vm915_vm1, %v901_v58  ;;  %918 = vst.msk [vmem:[%s2092_s13 + $0x10] sm:$0xff] %vm915_vm1, %v885_v59 }
 0x1de   : > { %v728_v60 = vpop.xlane.xlu1 %727  ;;  %v726_v61 = vpop.xlane.xlu0 %725 }
 0x1e2   : > { %v760_v63 = vpop.xlane.xlu1 %759  ;;  %v758_v62 = vpop.xlane.xlu0 %757 }
 0x1e6   : > { %v829_v0 = vpop.xlane.xlu1 %828  ;;  %v827_v1 = vpop.xlane.xlu0 %826 }
 0x1e7   : > { %v888_v4 = vsel %vm882_vm0, %v728_v60, %v829_v0  ;;  %v887_v5 = vsel %vm882_vm0, %v726_v61, %v827_v1 }
 0x1e8   : > { %921 = vst.msk [vmem:[%s2092_s13 + $0x28] sm:$0xff] %vm915_vm1, %v888_v4  ;;  %920 = vst.msk [vmem:[%s2092_s13 + $0x20] sm:$0xff] %vm915_vm1, %v887_v5 }
 0x1ea   : > { %v861_v8 = vpop.xlane.xlu1 %860  ;;  %v859_v9 = vpop.xlane.xlu0 %858 }
 0x1eb   : > { %v904_v10 = vsel %vm882_vm0, %v760_v63, %v861_v8  ;;  %v903_v13 = vsel %vm882_vm0, %v758_v62, %v859_v9 }
 0x1ec   : > { %937 = vst.msk [vmem:[%s2092_s13 + $0xa8] sm:$0xff] %vm915_vm1, %v904_v10  ;;  %936 = vst.msk [vmem:[%s2092_s13 + $0xa0] sm:$0xff] %vm915_vm1, %v903_v13 }
 0x1ee   : > { %v732_v16 = vpop.xlane.xlu1 %731  ;;  %v730_v17 = vpop.xlane.xlu0 %729 }
 0x1f2   : > { %v764_v18 = vpop.xlane.xlu1 %763  ;;  %v762_v21 = vpop.xlane.xlu0 %761 }
 0x1f6   : > { %v833_v24 = vpop.xlane.xlu1 %832  ;;  %v831_v25 = vpop.xlane.xlu0 %830 }
 0x1f7   : > { %v890_v26 = vsel %vm882_vm0, %v732_v16, %v833_v24  ;;  %v889_v28 = vsel %vm882_vm0, %v730_v17, %v831_v25 }
 0x1f8   : > { %923 = vst.msk [vmem:[%s2092_s13 + $0x38] sm:$0xff] %vm915_vm1, %v890_v26  ;;  %922 = vst.msk [vmem:[%s2092_s13 + $0x30] sm:$0xff] %vm915_vm1, %v889_v28 }
 0x1fa   : > { %v865_v29 = vpop.xlane.xlu1 %864  ;;  %v863_v35 = vpop.xlane.xlu0 %862 }
 0x1fb   : > { %v906_v36 = vsel %vm882_vm0, %v764_v18, %v865_v29  ;;  %v905_v2 = vsel %vm882_vm0, %v762_v21, %v863_v35 }
 0x1fc   : > { %939 = vst.msk [vmem:[%s2092_s13 + $0xb8] sm:$0xff] %vm915_vm1, %v906_v36  ;;  %938 = vst.msk [vmem:[%s2092_s13 + $0xb0] sm:$0xff] %vm915_vm1, %v905_v2 }
 0x1fe   : > { %v736_v6 = vpop.xlane.xlu1 %735  ;;  %v734_v3 = vpop.xlane.xlu0 %733 }
 0x202   : > { %v768_v7 = vpop.xlane.xlu1 %767  ;;  %v766_v37 = vpop.xlane.xlu0 %765 }
 0x206   : > { %v837_v38 = vpop.xlane.xlu1 %836  ;;  %v835_v40 = vpop.xlane.xlu0 %834 }
 0x207   : > { %v892_v42 = vsel %vm882_vm0, %v736_v6, %v837_v38  ;;  %v891_v11 = vsel %vm882_vm0, %v734_v3, %v835_v40 }
 0x208   : > { %925 = vst.msk [vmem:[%s2092_s13 + $0x48] sm:$0xff] %vm915_vm1, %v892_v42  ;;  %924 = vst.msk [vmem:[%s2092_s13 + $0x40] sm:$0xff] %vm915_vm1, %v891_v11 }
 0x20a   : > { %v869_v14 = vpop.xlane.xlu1 %868  ;;  %v867_v12 = vpop.xlane.xlu0 %866 }
 0x20b   : > { %v908_v15 = vsel %vm882_vm0, %v768_v7, %v869_v14  ;;  %v907_v47 = vsel %vm882_vm0, %v766_v37, %v867_v12 }
 0x20c   : > { %941 = vst.msk [vmem:[%s2092_s13 + $0xc8] sm:$0xff] %vm915_vm1, %v908_v15  ;;  %940 = vst.msk [vmem:[%s2092_s13 + $0xc0] sm:$0xff] %vm915_vm1, %v907_v47 }
 0x20e   : > { %v740_v49 = vpop.xlane.xlu1 %739  ;;  %v738_v50 = vpop.xlane.xlu0 %737 }
 0x212   : > { %v772_v51 = vpop.xlane.xlu1 %771  ;;  %v770_v19 = vpop.xlane.xlu0 %769 }
 0x216   : > { %v841_v48 = vpop.xlane.xlu1 %840  ;;  %v839_v55 = vpop.xlane.xlu0 %838 }
 0x217   : > { %v894_v20 = vsel %vm882_vm0, %v740_v49, %v841_v48  ;;  %v893_v22 = vsel %vm882_vm0, %v738_v50, %v839_v55 }
 0x218   : > { %927 = vst.msk [vmem:[%s2092_s13 + $0x58] sm:$0xff] %vm915_vm1, %v894_v20  ;;  %926 = vst.msk [vmem:[%s2092_s13 + $0x50] sm:$0xff] %vm915_vm1, %v893_v22 }
 0x21a   : > { %v873_v23 = vpop.xlane.xlu1 %872  ;;  %v871_v27 = vpop.xlane.xlu0 %870 }
 0x21b   : > { %v910_v30 = vsel %vm882_vm0, %v772_v51, %v873_v23  ;;  %v909_v31 = vsel %vm882_vm0, %v770_v19, %v871_v27 }
 0x21c   : > { %943 = vst.msk [vmem:[%s2092_s13 + $0xd8] sm:$0xff] %vm915_vm1, %v910_v30  ;;  %942 = vst.msk [vmem:[%s2092_s13 + $0xd0] sm:$0xff] %vm915_vm1, %v909_v31 }
 0x21e   : > { %v744_v32 = vpop.xlane.xlu1 %743  ;;  %v742_v33 = vpop.xlane.xlu0 %741 }
 0x222   : > { %v776_v34 = vpop.xlane.xlu1 %775  ;;  %v774_v39 = vpop.xlane.xlu0 %773 }
 0x226   : > { %v845_v41 = vpop.xlane.xlu1 %844  ;;  %v843_v43 = vpop.xlane.xlu0 %842 }
 0x227   : > { %v896_v44 = vsel %vm882_vm0, %v744_v32, %v845_v41  ;;  %v895_v45 = vsel %vm882_vm0, %v742_v33, %v843_v43 }
 0x228   : > { %929 = vst.msk [vmem:[%s2092_s13 + $0x68] sm:$0xff] %vm915_vm1, %v896_v44  ;;  %928 = vst.msk [vmem:[%s2092_s13 + $0x60] sm:$0xff] %vm915_vm1, %v895_v45 }
 0x22a   : > { %v877_v46 = vpop.xlane.xlu1 %876  ;;  %v875_v52 = vpop.xlane.xlu0 %874 }
 0x22b   : > { %v912_v53 = vsel %vm882_vm0, %v776_v34, %v877_v46  ;;  %v911_v54 = vsel %vm882_vm0, %v774_v39, %v875_v52 }
 0x22c   : > { %945 = vst.msk [vmem:[%s2092_s13 + $0xe8] sm:$0xff] %vm915_vm1, %v912_v53  ;;  %944 = vst.msk [vmem:[%s2092_s13 + $0xe0] sm:$0xff] %vm915_vm1, %v911_v54 }
 0x22e   : > { %v748_v56 = vpop.xlane.xlu1 %747  ;;  %v746_v57 = vpop.xlane.xlu0 %745 }
 0x232   : > { %v780_v58 = vpop.xlane.xlu1 %779  ;;  %v778_v59 = vpop.xlane.xlu0 %777 }
 0x236   : > { %v849_v60 = vpop.xlane.xlu1 %848  ;;  %v847_v61 = vpop.xlane.xlu0 %846 }
 0x237   : > { %v898_v63 = vsel %vm882_vm0, %v748_v56, %v849_v60  ;;  %v897_v62 = vsel %vm882_vm0, %v746_v57, %v847_v61 }
 0x238   : > { %931 = vst.msk [vmem:[%s2092_s13 + $0x78] sm:$0xff] %vm915_vm1, %v898_v63  ;;  %930 = vst.msk [vmem:[%s2092_s13 + $0x70] sm:$0xff] %vm915_vm1, %v897_v62 }
 0x23a   : > { %v881_v0 = vpop.xlane.xlu1 %880  ;;  %v879_v1 = vpop.xlane.xlu0 %878 }
 0x23b   : > { %v914_v4 = vsel %vm882_vm0, %v780_v58, %v881_v0  ;;  %v913_v5 = vsel %vm882_vm0, %v778_v59, %v879_v1 }
 0x23c   : > { %947 = vst.msk [vmem:[%s2092_s13 + $0xf8] sm:$0xff] %vm915_vm1, %v914_v4  ;;  %946 = vst.msk [vmem:[%s2092_s13 + $0xf0] sm:$0xff] %vm915_vm1, %v913_v5 }
 0x23d PF: > { %s986_s10 = sand.u32 1, %s1591_s15   ;;  %p2229_p7 = scmp.ne.s32.totalorder %s2218_s22, 0 }
 0x23e   : > { %p2230_p9 = scmp.ge.s32.totalorder %s1603_s18, 2  ;;  %s987_s30 = scalar_lea.sflag [#allocation4], %s986_s10 }
 0x240   : > { %p1437_p10 = pnand %p2230_p9, %p2229_p7 }
 0x242   : > { %p1438_p12 = pneg %p1437_p10 }
 0x244   : > { %1586 = dma.done.wait (%p1438_p12), %s987_s30, 2048  }
 0x245   : > { %1588 = vsyncadd (%p1438_p12), %s987_s30, 4294965248  ;;  %p19_p13 = scmp.ge.s32.totalorder %s1691_s27, 4   ;;  %s2231_s15 = smov %s1595_s16 }
 0x246   : > { %s2232_s16 = smov %s1599_s17  ;;  %s2233_s17 = smov %s1711_s9 }
 0x247   : > { %s2234_s18 = smov %s1691_s27  ;;  %21 = sbr.rel (!%p19_p13) target bundleno = 6 (0x6), region = 93 }
 0x24c   :  { %1000 = vsyncpa [#allocation3], 1 }
 0x24d   :  { %1002 = vsyncpa [#allocation3 + $0x1], 1 }
 0x24e   :  { %1003 = vsyncpa [#allocation6], 1 }
 0x24f   :  { %1004 = vsyncpa [#allocation4], 1 }
 0x250   :  { %1006 = vsyncpa [#allocation4 + $0x1], 1 }

</bundles_post_ra>
